<compile_context>
chip_gen: v6e
topology: v6e:2x2x1
jax: 0.10.0
libtpu: 0.0.40
codegen_flags: <defaults>
</compile_context>

<pallas_src>
import numpy as np
import jax
import jax.numpy as jnp
from jax import lax
from jax.experimental import pallas as pl
from jax.experimental.pallas import tpu as pltpu


# ----------------------------------------------------------------------------
# Fused kernel (spatial on lanes, channels on sublanes)
# ----------------------------------------------------------------------------
def _make_fused_kernel(H, W, Cin, Cmid, Cout, stride, B):
    S = H * W
    Ho, Wo = H // stride, W // stride
    So = Ho * Wo

    def kernel(*refs):
        if stride == 1:
            (x_ref, w1_ref, b1_ref, w2_ref, b2_ref, w3_ref, b3_ref,
             m_ref, out_ref) = refs
        else:
            (x_ref, w1_ref, b1_ref, w2_ref, b2_ref, w3_ref, b3_ref,
             m_ref, sel_ref, pool_ref, out_ref) = refs

        w1 = w1_ref[...]              # (Cmid, Cin)  BN1 scale + channel shuffle folded
        b1 = b1_ref[...]              # (Cmid, 1)
        b2 = b2_ref[...]              # (Cmid, 1)
        w3 = w3_ref[...]              # (Cout, Cmid) BN3 scale folded
        b3 = b3_ref[...]              # (Cout, 1)
        if stride == 2:
            sel = sel_ref[...]        # (S, So)  one-hot stride-2 subsample
            pmat = pool_ref[...]      # (S, So)  AvgPool(3,2,1) weights (1/9)

        for b in range(B):
            xb = x_ref[b]                                          # (Cin, S)

            # conv1: 1x1 grouped conv as a dense block-diag matmul + BN1 + ReLU.
            t = jnp.dot(w1, xb, preferred_element_type=jnp.float32)
            t = jnp.maximum(t + b1, 0.0)                           # (Cmid, S)

            # conv2: 3x3 depthwise (stride-1 form), padding=1: 9 lane rolls of the
            # flattened spatial axis, border-wrap positions masked to zero.
            acc = None
            for dy in range(3):
                for dx in range(3):
                    k = 3 * dy + dx
                    off = (dy - 1) * W + (dx - 1)
                    v = t if off == 0 else pltpu.roll(t, (-off) % S, axis=1)
                    c = v * m_ref[k] * w2_ref[k]   # (Cmid,S)*(1,S)*(Cmid,1)
                    acc = c if acc is None else acc + c
            d = jnp.maximum(acc + b2, 0.0)                         # (Cmid, S)

            if stride == 1:
                # conv3 + BN3, residual add, ReLU (lane-dense (Cout, S) store).
                o3 = jnp.dot(w3, d, preferred_element_type=jnp.float32) + b3
                out_ref[b] = jnp.maximum(o3 + xb, 0.0)
            else:
                # Subsample depthwise output to the stride-2 grid, conv3 + BN3.
                d_sub = jnp.dot(d, sel, preferred_element_type=jnp.float32)
                o3 = jnp.dot(w3, d_sub, preferred_element_type=jnp.float32) + b3
                out_ref[b, 0:Cout, :] = jnp.maximum(o3, 0.0)
                # AvgPool shortcut written into the remaining output channels
                # (channel concat happens via disjoint sublane ranges).
                pool = jnp.dot(xb, pmat, preferred_element_type=jnp.float32)
                out_ref[b, Cout:Cout + Cin, :] = jnp.maximum(pool, 0.0)

    return kernel


# ----------------------------------------------------------------------------
# Parameter glue (plain JAX / numpy, all done once at trace time)
# ----------------------------------------------------------------------------
def _fold_bn(gamma, beta, mean, var, eps=1e-5):
    scale = gamma / jnp.sqrt(var + eps)
    return scale, beta - mean * scale


def _grouped_1x1_dense(w, groups):
    """(Cout, Cin//groups, 1, 1) grouped 1x1 conv weight -> dense (Cout, Cin)."""
    Cout, Cin_pg = w.shape[0], w.shape[1]
    Cin = Cin_pg * groups
    Cout_pg = Cout // groups
    dense = jnp.zeros((Cout, Cin), jnp.float32)
    for gi in range(groups):
        blk = w[gi * Cout_pg:(gi + 1) * Cout_pg, :, 0, 0]          # (Cout_pg, Cin_pg)
        dense = dense.at[gi * Cout_pg:(gi + 1) * Cout_pg,
                         gi * Cin_pg:(gi + 1) * Cin_pg].set(blk)
    return dense


def init_params(key, in_planes, out_planes, groups):
    mid = out_planes // 4
    g = 1 if in_planes == 24 else groups
    ks = jax.random.split(key, 6)

    def bn(k, c):
        k1, k2, k3, k4 = jax.random.split(k, 4)
        gamma = jax.random.uniform(k1, (c,), jnp.float32, 0.5, 1.5)
        beta = 0.1 * jax.random.normal(k2, (c,), jnp.float32)
        mean = 0.1 * jax.random.normal(k3, (c,), jnp.float32)
        var = jax.random.uniform(k4, (c,), jnp.float32, 0.5, 1.5)
        return gamma, beta, mean, var

    return {
        'w1': 0.2 * jax.random.normal(ks[0], (mid, in_planes // g, 1, 1), jnp.float32),
        'bn1': bn(ks[1], mid),
        'w2': 0.2 * jax.random.normal(ks[2], (mid, 1, 3, 3), jnp.float32),
        'bn2': bn(ks[3], mid),
        'w3': 0.2 * jax.random.normal(ks[4], (out_planes, mid // groups, 1, 1), jnp.float32),
        'bn3': bn(ks[5], out_planes),
    }


def _choose_batching(N):
    # >=2 'parallel' grid steps when possible (keeps both v7x TensorCores busy),
    # several images per step to amortize the ~0.35us fixed per-step overhead.
    if N >= 2 and N % 2 == 0:
        steps = 2
        while N // steps > 8 and N % (steps * 2) == 0:
            steps *= 2
        return steps, N // steps
    return N, 1


# ----------------------------------------------------------------------------
# Pallas wrapper
# ----------------------------------------------------------------------------
def shuffle_bottleneck_pallas(x_nchw, params, *, in_planes, out_planes, stride, groups):
    assert stride in (1, 2)
    if stride == 1:
        assert in_planes == out_planes, "stride-1 residual add needs in==out planes"
    N, C, H, W = x_nchw.shape
    assert C == in_planes and H % stride == 0 and W % stride == 0
    mid = out_planes // 4
    g = 1 if in_planes == 24 else groups
    S = H * W
    Ho, Wo = H // stride, W // stride
    So = Ho * Wo
    Ctot = out_planes + (in_planes if stride == 2 else 0)
    So_out = S if stride == 1 else So

    # NCHW -> (N, Cin, H*W): channels on sublanes, spatial on lanes (free reshape).
    x = x_nchw.astype(jnp.float32).reshape(N, in_planes, S)

    # Fold BN (inference mode) scales into the conv weights; fold the channel
    # shuffle into conv1's output rows.  Only bias adds remain in the kernel.
    s1, b1 = _fold_bn(*params['bn1'])
    s2, b2 = _fold_bn(*params['bn2'])
    s3, b3 = _fold_bn(*params['bn3'])

    perm = np.arange(mid).reshape(g, mid // g).T.reshape(-1)            # channel shuffle
    w1k = (_grouped_1x1_dense(params['w1'], g) * s1[:, None])[perm]     # (mid, Cin)
    b1k = b1[perm].reshape(mid, 1)
    w2k = (params['w2'][:, 0, :, :].reshape(mid, 9) * s2[:, None]).T.reshape(9, mid, 1)
    b2k = b2.reshape(mid, 1)
    w3k = _grouped_1x1_dense(params['w3'], groups) * s3[:, None]        # (Cout, mid)
    b3k = b3.reshape(out_planes, 1)

    # Border masks for the 9 depthwise lane-roll taps (wrap positions -> 0).
    tap_masks = np.zeros((9, 1, S), np.float32)
    for dy in range(3):
        for dx in range(3):
            vh = ((np.arange(H) + dy - 1 >= 0) & (np.arange(H) + dy - 1 < H)).astype(np.float32)
            vw = ((np.arange(W) + dx - 1 >= 0) & (np.arange(W) + dx - 1 < W)).astype(np.float32)
            tap_masks[3 * dy + dx, 0, :] = np.outer(vh, vw).reshape(S)

    num_steps, B = _choose_batching(N)

    def const_spec(shape):
        nd = len(shape)
        return pl.BlockSpec(shape, lambda n, _nd=nd: (0,) * _nd)

    in_arrays = [x, w1k, b1k, w2k, b2k, w3k, b3k, jnp.asarray(tap_masks)]
    in_specs = [
        pl.BlockSpec((B, in_planes, S), lambda n: (n, 0, 0)),
        const_spec((mid, in_planes)),
        const_spec((mid, 1)),
        const_spec((9, mid, 1)),
        const_spec((mid, 1)),
        const_spec((out_planes, mid)),
        const_spec((out_planes, 1)),
        const_spec((9, 1, S)),
    ]
    if stride == 2:
        sel = np.zeros((S, So), np.float32)
        pmat = np.zeros((S, So), np.float32)
        for ho in range(Ho):
            for wo in range(Wo):
                o = ho * Wo + wo
                sel[(stride * ho) * W + stride * wo, o] = 1.0
                for dy in range(3):
                    for dx in range(3):
                        hh, ww = stride * ho + dy - 1, stride * wo + dx - 1
                        if 0 <= hh < H and 0 <= ww < W:
                            pmat[hh * W + ww, o] = 1.0 / 9.0   # count_include_pad=True
        in_arrays += [jnp.asarray(sel), jnp.asarray(pmat)]
        in_specs += [const_spec((S, So)), const_spec((S, So))]

    out = pl.pallas_call(
        _make_fused_kernel(H, W, in_planes, mid, out_planes, stride, B),
        out_shape=jax.ShapeDtypeStruct((N, Ctot, So_out), jnp.float32),
        grid=(num_steps,),
        in_specs=in_specs,
        out_specs=pl.BlockSpec((B, Ctot, So_out), lambda n: (n, 0, 0)),
        compiler_params=pltpu.CompilerParams(dimension_semantics=("parallel",)),
    )(*in_arrays)

    # (N, Ctot, Ho*Wo) is already NCHW-flattened -> just reshape (free).
    return out.reshape(N, Ctot, Ho, Wo)


# ----------------------------------------------------------------------------
# Pure-JAX reference (mirrors the PyTorch forward, inference-mode BN)
# ----------------------------------------------------------------------------
def reference_forward(x, p, in_planes, out_planes, stride, groups):
    g = 1 if in_planes == 24 else groups
    mid = out_planes // 4
    dn = ('NCHW', 'OIHW', 'NCHW')
    hp = lax.Precision.HIGHEST

    def bn(y, prm):
        gamma, beta, mean, var = prm
        sh = (1, -1, 1, 1)
        return ((y - mean.reshape(sh)) / jnp.sqrt(var.reshape(sh) + 1e-5)
                * gamma.reshape(sh) + beta.reshape(sh))

    out = lax.conv_general_dilated(x, p['w1'], (1, 1), 'VALID',
                                   feature_group_count=g, dimension_numbers=dn,
                                   precision=hp)
    out = jax.nn.relu(bn(out, p['bn1']))
    N, C, H, W = out.shape
    out = out.reshape(N, g, C // g, H, W).transpose(0, 2, 1, 3, 4).reshape(N, C, H, W)
    out = lax.conv_general_dilated(out, p['w2'], (stride, stride), ((1, 1), (1, 1)),
                                   feature_group_count=mid, dimension_numbers=dn,
                                   precision=hp)
    out = jax.nn.relu(bn(out, p['bn2']))
    out = lax.conv_general_dilated(out, p['w3'], (1, 1), 'VALID',
                                   feature_group_count=groups, dimension_numbers=dn,
                                   precision=hp)
    out = bn(out, p['bn3'])
    if stride == 2:
        s = lax.reduce_window(x, 0.0, lax.add, (1, 1, 3, 3), (1, 1, 2, 2),
                              ((0, 0), (0, 0), (1, 1), (1, 1)))
        res = s / 9.0                        # count_include_pad=True -> divisor 9
        out = jax.nn.relu(jnp.concatenate([out, res], axis=1))
    else:
        out = jax.nn.relu(out + x)
    return out


# ----------------------------------------------------------------------------
if __name__ == "__main__":
    key = jax.random.PRNGKey(0)
    configs = [
        dict(in_planes=32, out_planes=32, stride=1, groups=2, N=2, H=16, W=16),
        dict(in_planes=16, out_planes=32, stride=2, groups=2, N=2, H=16, W=16),
    ]
    for cfg in configs:
        kp, kx, key = jax.random.split(key, 3)
        params = init_params(kp, cfg['in_planes'], cfg['out_planes'], cfg['groups'])
        x = jax.random.normal(kx, (cfg['N'], cfg['in_planes'], cfg['H'], cfg['W']),
                              jnp.float32)

        y = shuffle_bottleneck_pallas(
            x, params,
            in_planes=cfg['in_planes'], out_planes=cfg['out_planes'],
            stride=cfg['stride'], groups=cfg['groups'])
        y = jax.block_until_ready(y)

        y_ref = reference_forward(x, params, cfg['in_planes'], cfg['out_planes'],
                                  cfg['stride'], cfg['groups'])
        np.testing.assert_allclose(np.asarray(y), np.asarray(y_ref),
                                   rtol=2e-2, atol=2e-2)

    print("KERNEL_OK")
</pallas_src>

<mosaic_0001>
module attributes {stable_mosaic.version = 11 : i64} {
  func.func @kernel(%arg0: i32, %arg1: memref<1x32x256xf32, #tpu.memory_space<vmem>>, %arg2: memref<8x32xf32, #tpu.memory_space<vmem>>, %arg3: memref<8x1xf32, #tpu.memory_space<vmem>>, %arg4: memref<9x8x1xf32, #tpu.memory_space<vmem>>, %arg5: memref<8x1xf32, #tpu.memory_space<vmem>>, %arg6: memref<32x8xf32, #tpu.memory_space<vmem>>, %arg7: memref<32x1xf32, #tpu.memory_space<vmem>>, %arg8: memref<9x1x256xf32, #tpu.memory_space<vmem>>, %arg9: memref<1x32x256xf32, #tpu.memory_space<vmem>>) attributes {dimension_semantics = [#tpu.dimension_semantics<parallel>], iteration_bounds = array<i64: 2>, scalar_prefetch = 0 : i64, scratch_operands = 0 : i64, tpu.core_type = #tpu.core_type<tc>, window_params = [{transform_indices = @transform_0, window_bounds = array<i64: 1, 32, 256>}, {pipeline_mode = #tpu.pipeline_mode<synchronous>, transform_indices = @transform_1, window_bounds = array<i64: 8, 32>}, {pipeline_mode = #tpu.pipeline_mode<synchronous>, transform_indices = @transform_2, window_bounds = array<i64: 8, 1>}, {pipeline_mode = #tpu.pipeline_mode<synchronous>, transform_indices = @transform_3, window_bounds = array<i64: 9, 8, 1>}, {pipeline_mode = #tpu.pipeline_mode<synchronous>, transform_indices = @transform_4, window_bounds = array<i64: 8, 1>}, {pipeline_mode = #tpu.pipeline_mode<synchronous>, transform_indices = @transform_5, window_bounds = array<i64: 32, 8>}, {pipeline_mode = #tpu.pipeline_mode<synchronous>, transform_indices = @transform_6, window_bounds = array<i64: 32, 1>}, {pipeline_mode = #tpu.pipeline_mode<synchronous>, transform_indices = @transform_7, window_bounds = array<i64: 9, 1, 256>}, {transform_indices = @transform_8, window_bounds = array<i64: 1, 32, 256>}]} {
    %c0 = arith.constant 0 : index
    %c0_0 = arith.constant 0 : index
    %0 = vector.load %arg2[%c0, %c0_0] : memref<8x32xf32, #tpu.memory_space<vmem>>, vector<8x32xf32>
    %c0_1 = arith.constant 0 : index
    %c0_2 = arith.constant 0 : index
    %1 = vector.load %arg3[%c0_1, %c0_2] : memref<8x1xf32, #tpu.memory_space<vmem>>, vector<8x1xf32>
    %c0_3 = arith.constant 0 : index
    %c0_4 = arith.constant 0 : index
    %2 = vector.load %arg5[%c0_3, %c0_4] : memref<8x1xf32, #tpu.memory_space<vmem>>, vector<8x1xf32>
    %c0_5 = arith.constant 0 : index
    %c0_6 = arith.constant 0 : index
    %3 = vector.load %arg6[%c0_5, %c0_6] : memref<32x8xf32, #tpu.memory_space<vmem>>, vector<32x8xf32>
    %c0_7 = arith.constant 0 : index
    %c0_8 = arith.constant 0 : index
    %4 = vector.load %arg7[%c0_7, %c0_8] : memref<32x1xf32, #tpu.memory_space<vmem>>, vector<32x1xf32>
    %c0_9 = arith.constant 0 : index
    %c0_10 = arith.constant 0 : index
    %c0_11 = arith.constant 0 : index
    %5 = vector.load %arg1[%c0_9, %c0_10, %c0_11] : memref<1x32x256xf32, #tpu.memory_space<vmem>>, vector<1x32x256xf32>
    %6 = vector.shape_cast %5 : vector<1x32x256xf32> to vector<32x256xf32>
    %cst = arith.constant dense<0.000000e+00> : vector<8x256xf32>
    %7 = tpu.matmul %0, %6, %cst {dimension_numbers = #tpu.dot_dimension_numbers<[1], [0], [0], [1], [0, 0, 1, 1], [], []>} : vector<8x32xf32>, vector<32x256xf32>, vector<8x256xf32> -> vector<8x256xf32>
    %8 = vector.broadcast %1 : vector<8x1xf32> to vector<8x256xf32>
    %9 = arith.addf %7, %8 : vector<8x256xf32>
    %cst_12 = arith.constant 0.000000e+00 : f32
    %10 = vector.broadcast %cst_12 : f32 to vector<8x256xf32>
    %11 = arith.maximumf %9, %10 : vector<8x256xf32>
    %c17_i32 = arith.constant 17 : i32
    %12 = tpu.dynamic_rotate %11 by %c17_i32 dim 1 : vector<8x256xf32>, i32 -> vector<8x256xf32>
    %c0_13 = arith.constant 0 : index
    %c0_14 = arith.constant 0 : index
    %c0_15 = arith.constant 0 : index
    %13 = vector.load %arg8[%c0_13, %c0_14, %c0_15] : memref<9x1x256xf32, #tpu.memory_space<vmem>>, vector<1x1x256xf32>
    %14 = vector.shape_cast %13 : vector<1x1x256xf32> to vector<1x256xf32>
    %15 = vector.broadcast %14 : vector<1x256xf32> to vector<8x256xf32>
    %16 = arith.mulf %12, %15 : vector<8x256xf32>
    %c0_16 = arith.constant 0 : index
    %c0_17 = arith.constant 0 : index
    %c0_18 = arith.constant 0 : index
    %17 = vector.load %arg4[%c0_16, %c0_17, %c0_18] : memref<9x8x1xf32, #tpu.memory_space<vmem>>, vector<1x8x1xf32>
    %18 = vector.shape_cast %17 : vector<1x8x1xf32> to vector<8x1xf32>
    %19 = vector.broadcast %18 : vector<8x1xf32> to vector<8x256xf32>
    %20 = arith.mulf %16, %19 : vector<8x256xf32>
    %c16_i32 = arith.constant 16 : i32
    %21 = tpu.dynamic_rotate %11 by %c16_i32 dim 1 : vector<8x256xf32>, i32 -> vector<8x256xf32>
    %c1 = arith.constant 1 : index
    %c0_19 = arith.constant 0 : index
    %c0_20 = arith.constant 0 : index
    %22 = vector.load %arg8[%c1, %c0_19, %c0_20] : memref<9x1x256xf32, #tpu.memory_space<vmem>>, vector<1x1x256xf32>
    %23 = vector.shape_cast %22 : vector<1x1x256xf32> to vector<1x256xf32>
    %24 = vector.broadcast %23 : vector<1x256xf32> to vector<8x256xf32>
    %25 = arith.mulf %21, %24 : vector<8x256xf32>
    %c1_21 = arith.constant 1 : index
    %c0_22 = arith.constant 0 : index
    %c0_23 = arith.constant 0 : index
    %26 = vector.load %arg4[%c1_21, %c0_22, %c0_23] : memref<9x8x1xf32, #tpu.memory_space<vmem>>, vector<1x8x1xf32>
    %27 = vector.shape_cast %26 : vector<1x8x1xf32> to vector<8x1xf32>
    %28 = vector.broadcast %27 : vector<8x1xf32> to vector<8x256xf32>
    %29 = arith.mulf %25, %28 : vector<8x256xf32>
    %30 = arith.addf %20, %29 : vector<8x256xf32>
    %c15_i32 = arith.constant 15 : i32
    %31 = tpu.dynamic_rotate %11 by %c15_i32 dim 1 : vector<8x256xf32>, i32 -> vector<8x256xf32>
    %c2 = arith.constant 2 : index
    %c0_24 = arith.constant 0 : index
    %c0_25 = arith.constant 0 : index
    %32 = vector.load %arg8[%c2, %c0_24, %c0_25] : memref<9x1x256xf32, #tpu.memory_space<vmem>>, vector<1x1x256xf32>
    %33 = vector.shape_cast %32 : vector<1x1x256xf32> to vector<1x256xf32>
    %34 = vector.broadcast %33 : vector<1x256xf32> to vector<8x256xf32>
    %35 = arith.mulf %31, %34 : vector<8x256xf32>
    %c2_26 = arith.constant 2 : index
    %c0_27 = arith.constant 0 : index
    %c0_28 = arith.constant 0 : index
    %36 = vector.load %arg4[%c2_26, %c0_27, %c0_28] : memref<9x8x1xf32, #tpu.memory_space<vmem>>, vector<1x8x1xf32>
    %37 = vector.shape_cast %36 : vector<1x8x1xf32> to vector<8x1xf32>
    %38 = vector.broadcast %37 : vector<8x1xf32> to vector<8x256xf32>
    %39 = arith.mulf %35, %38 : vector<8x256xf32>
    %40 = arith.addf %30, %39 : vector<8x256xf32>
    %c1_i32 = arith.constant 1 : i32
    %41 = tpu.dynamic_rotate %11 by %c1_i32 dim 1 : vector<8x256xf32>, i32 -> vector<8x256xf32>
    %c3 = arith.constant 3 : index
    %c0_29 = arith.constant 0 : index
    %c0_30 = arith.constant 0 : index
    %42 = vector.load %arg8[%c3, %c0_29, %c0_30] : memref<9x1x256xf32, #tpu.memory_space<vmem>>, vector<1x1x256xf32>
    %43 = vector.shape_cast %42 : vector<1x1x256xf32> to vector<1x256xf32>
    %44 = vector.broadcast %43 : vector<1x256xf32> to vector<8x256xf32>
    %45 = arith.mulf %41, %44 : vector<8x256xf32>
    %c3_31 = arith.constant 3 : index
    %c0_32 = arith.constant 0 : index
    %c0_33 = arith.constant 0 : index
    %46 = vector.load %arg4[%c3_31, %c0_32, %c0_33] : memref<9x8x1xf32, #tpu.memory_space<vmem>>, vector<1x8x1xf32>
    %47 = vector.shape_cast %46 : vector<1x8x1xf32> to vector<8x1xf32>
    %48 = vector.broadcast %47 : vector<8x1xf32> to vector<8x256xf32>
    %49 = arith.mulf %45, %48 : vector<8x256xf32>
    %50 = arith.addf %40, %49 : vector<8x256xf32>
    %c4 = arith.constant 4 : index
    %c0_34 = arith.constant 0 : index
    %c0_35 = arith.constant 0 : index
    %51 = vector.load %arg8[%c4, %c0_34, %c0_35] : memref<9x1x256xf32, #tpu.memory_space<vmem>>, vector<1x1x256xf32>
    %52 = vector.shape_cast %51 : vector<1x1x256xf32> to vector<1x256xf32>
    %53 = vector.broadcast %52 : vector<1x256xf32> to vector<8x256xf32>
    %54 = arith.mulf %11, %53 : vector<8x256xf32>
    %c4_36 = arith.constant 4 : index
    %c0_37 = arith.constant 0 : index
    %c0_38 = arith.constant 0 : index
    %55 = vector.load %arg4[%c4_36, %c0_37, %c0_38] : memref<9x8x1xf32, #tpu.memory_space<vmem>>, vector<1x8x1xf32>
    %56 = vector.shape_cast %55 : vector<1x8x1xf32> to vector<8x1xf32>
    %57 = vector.broadcast %56 : vector<8x1xf32> to vector<8x256xf32>
    %58 = arith.mulf %54, %57 : vector<8x256xf32>
    %59 = arith.addf %50, %58 : vector<8x256xf32>
    %c255_i32 = arith.constant 255 : i32
    %60 = tpu.dynamic_rotate %11 by %c255_i32 dim 1 : vector<8x256xf32>, i32 -> vector<8x256xf32>
    %c5 = arith.constant 5 : index
    %c0_39 = arith.constant 0 : index
    %c0_40 = arith.constant 0 : index
    %61 = vector.load %arg8[%c5, %c0_39, %c0_40] : memref<9x1x256xf32, #tpu.memory_space<vmem>>, vector<1x1x256xf32>
    %62 = vector.shape_cast %61 : vector<1x1x256xf32> to vector<1x256xf32>
    %63 = vector.broadcast %62 : vector<1x256xf32> to vector<8x256xf32>
    %64 = arith.mulf %60, %63 : vector<8x256xf32>
    %c5_41 = arith.constant 5 : index
    %c0_42 = arith.constant 0 : index
    %c0_43 = arith.constant 0 : index
    %65 = vector.load %arg4[%c5_41, %c0_42, %c0_43] : memref<9x8x1xf32, #tpu.memory_space<vmem>>, vector<1x8x1xf32>
    %66 = vector.shape_cast %65 : vector<1x8x1xf32> to vector<8x1xf32>
    %67 = vector.broadcast %66 : vector<8x1xf32> to vector<8x256xf32>
    %68 = arith.mulf %64, %67 : vector<8x256xf32>
    %69 = arith.addf %59, %68 : vector<8x256xf32>
    %c241_i32 = arith.constant 241 : i32
    %70 = tpu.dynamic_rotate %11 by %c241_i32 dim 1 : vector<8x256xf32>, i32 -> vector<8x256xf32>
    %c6 = arith.constant 6 : index
    %c0_44 = arith.constant 0 : index
    %c0_45 = arith.constant 0 : index
    %71 = vector.load %arg8[%c6, %c0_44, %c0_45] : memref<9x1x256xf32, #tpu.memory_space<vmem>>, vector<1x1x256xf32>
    %72 = vector.shape_cast %71 : vector<1x1x256xf32> to vector<1x256xf32>
    %73 = vector.broadcast %72 : vector<1x256xf32> to vector<8x256xf32>
    %74 = arith.mulf %70, %73 : vector<8x256xf32>
    %c6_46 = arith.constant 6 : index
    %c0_47 = arith.constant 0 : index
    %c0_48 = arith.constant 0 : index
    %75 = vector.load %arg4[%c6_46, %c0_47, %c0_48] : memref<9x8x1xf32, #tpu.memory_space<vmem>>, vector<1x8x1xf32>
    %76 = vector.shape_cast %75 : vector<1x8x1xf32> to vector<8x1xf32>
    %77 = vector.broadcast %76 : vector<8x1xf32> to vector<8x256xf32>
    %78 = arith.mulf %74, %77 : vector<8x256xf32>
    %79 = arith.addf %69, %78 : vector<8x256xf32>
    %c240_i32 = arith.constant 240 : i32
    %80 = tpu.dynamic_rotate %11 by %c240_i32 dim 1 : vector<8x256xf32>, i32 -> vector<8x256xf32>
    %c7 = arith.constant 7 : index
    %c0_49 = arith.constant 0 : index
    %c0_50 = arith.constant 0 : index
    %81 = vector.load %arg8[%c7, %c0_49, %c0_50] : memref<9x1x256xf32, #tpu.memory_space<vmem>>, vector<1x1x256xf32>
    %82 = vector.shape_cast %81 : vector<1x1x256xf32> to vector<1x256xf32>
    %83 = vector.broadcast %82 : vector<1x256xf32> to vector<8x256xf32>
    %84 = arith.mulf %80, %83 : vector<8x256xf32>
    %c7_51 = arith.constant 7 : index
    %c0_52 = arith.constant 0 : index
    %c0_53 = arith.constant 0 : index
    %85 = vector.load %arg4[%c7_51, %c0_52, %c0_53] : memref<9x8x1xf32, #tpu.memory_space<vmem>>, vector<1x8x1xf32>
    %86 = vector.shape_cast %85 : vector<1x8x1xf32> to vector<8x1xf32>
    %87 = vector.broadcast %86 : vector<8x1xf32> to vector<8x256xf32>
    %88 = arith.mulf %84, %87 : vector<8x256xf32>
    %89 = arith.addf %79, %88 : vector<8x256xf32>
    %c239_i32 = arith.constant 239 : i32
    %90 = tpu.dynamic_rotate %11 by %c239_i32 dim 1 : vector<8x256xf32>, i32 -> vector<8x256xf32>
    %c8 = arith.constant 8 : index
    %c0_54 = arith.constant 0 : index
    %c0_55 = arith.constant 0 : index
    %91 = vector.load %arg8[%c8, %c0_54, %c0_55] : memref<9x1x256xf32, #tpu.memory_space<vmem>>, vector<1x1x256xf32>
    %92 = vector.shape_cast %91 : vector<1x1x256xf32> to vector<1x256xf32>
    %93 = vector.broadcast %92 : vector<1x256xf32> to vector<8x256xf32>
    %94 = arith.mulf %90, %93 : vector<8x256xf32>
    %c8_56 = arith.constant 8 : index
    %c0_57 = arith.constant 0 : index
    %c0_58 = arith.constant 0 : index
    %95 = vector.load %arg4[%c8_56, %c0_57, %c0_58] : memref<9x8x1xf32, #tpu.memory_space<vmem>>, vector<1x8x1xf32>
    %96 = vector.shape_cast %95 : vector<1x8x1xf32> to vector<8x1xf32>
    %97 = vector.broadcast %96 : vector<8x1xf32> to vector<8x256xf32>
    %98 = arith.mulf %94, %97 : vector<8x256xf32>
    %99 = arith.addf %89, %98 : vector<8x256xf32>
    %100 = vector.broadcast %2 : vector<8x1xf32> to vector<8x256xf32>
    %101 = arith.addf %99, %100 : vector<8x256xf32>
    %cst_59 = arith.constant 0.000000e+00 : f32
    %102 = vector.broadcast %cst_59 : f32 to vector<8x256xf32>
    %103 = arith.maximumf %101, %102 : vector<8x256xf32>
    %cst_60 = arith.constant dense<0.000000e+00> : vector<32x256xf32>
    %104 = tpu.matmul %3, %103, %cst_60 {dimension_numbers = #tpu.dot_dimension_numbers<[1], [0], [0], [1], [0, 0, 1, 1], [], []>} : vector<32x8xf32>, vector<8x256xf32>, vector<32x256xf32> -> vector<32x256xf32>
    %105 = vector.broadcast %4 : vector<32x1xf32> to vector<32x256xf32>
    %106 = arith.addf %104, %105 : vector<32x256xf32>
    %107 = arith.addf %106, %6 : vector<32x256xf32>
    %cst_61 = arith.constant 0.000000e+00 : f32
    %108 = vector.broadcast %cst_61 : f32 to vector<32x256xf32>
    %109 = arith.maximumf %107, %108 : vector<32x256xf32>
    %c0_62 = arith.constant 0 : index
    %c0_63 = arith.constant 0 : index
    %c0_64 = arith.constant 0 : index
    %110 = vector.load %arg9[%c0_62, %c0_63, %c0_64] : memref<1x32x256xf32, #tpu.memory_space<vmem>>, vector<1x32x256xf32>
    %111 = vector.shape_cast %110 : vector<1x32x256xf32> to vector<32x256xf32>
    %112 = vector.shape_cast %109 : vector<32x256xf32> to vector<1x32x256xf32>
    tpu.vector_store %arg9[%c0_62, %c0_63, %c0_64], %112 {strides = array<i32>} : memref<1x32x256xf32, #tpu.memory_space<vmem>>, vector<1x32x256xf32>,
    return
  }
  func.func @transform_0(%arg0: i32) -> (i32, i32, i32) {
    %c0_i32 = arith.constant 0 : i32
    %c0_i32_0 = arith.constant 0 : i32
    %c0_i32_1 = arith.constant 0 : i32
    return %arg0, %c0_i32, %c0_i32_0 : i32, i32, i32
  }
  func.func @transform_1(%arg0: i32) -> (i32, i32) {
    %c0_i32 = arith.constant 0 : i32
    %c0_i32_0 = arith.constant 0 : i32
    %c0_i32_1 = arith.constant 0 : i32
    return %c0_i32, %c0_i32_0 : i32, i32
  }
  func.func @transform_2(%arg0: i32) -> (i32, i32) {
    %c0_i32 = arith.constant 0 : i32
    %c0_i32_0 = arith.constant 0 : i32
    %c0_i32_1 = arith.constant 0 : i32
    return %c0_i32, %c0_i32_0 : i32, i32
  }
  func.func @transform_3(%arg0: i32) -> (i32, i32, i32) {
    %c0_i32 = arith.constant 0 : i32
    %c0_i32_0 = arith.constant 0 : i32
    %c0_i32_1 = arith.constant 0 : i32
    %c0_i32_2 = arith.constant 0 : i32
    return %c0_i32, %c0_i32_0, %c0_i32_1 : i32, i32, i32
  }
  func.func @transform_4(%arg0: i32) -> (i32, i32) {
    %c0_i32 = arith.constant 0 : i32
    %c0_i32_0 = arith.constant 0 : i32
    %c0_i32_1 = arith.constant 0 : i32
    return %c0_i32, %c0_i32_0 : i32, i32
  }
  func.func @transform_5(%arg0: i32) -> (i32, i32) {
    %c0_i32 = arith.constant 0 : i32
    %c0_i32_0 = arith.constant 0 : i32
    %c0_i32_1 = arith.constant 0 : i32
    return %c0_i32, %c0_i32_0 : i32, i32
  }
  func.func @transform_6(%arg0: i32) -> (i32, i32) {
    %c0_i32 = arith.constant 0 : i32
    %c0_i32_0 = arith.constant 0 : i32
    %c0_i32_1 = arith.constant 0 : i32
    return %c0_i32, %c0_i32_0 : i32, i32
  }
  func.func @transform_7(%arg0: i32) -> (i32, i32, i32) {
    %c0_i32 = arith.constant 0 : i32
    %c0_i32_0 = arith.constant 0 : i32
    %c0_i32_1 = arith.constant 0 : i32
    %c0_i32_2 = arith.constant 0 : i32
    return %c0_i32, %c0_i32_0, %c0_i32_1 : i32, i32, i32
  }
  func.func @transform_8(%arg0: i32) -> (i32, i32, i32) {
    %c0_i32 = arith.constant 0 : i32
    %c0_i32_0 = arith.constant 0 : i32
    %c0_i32_1 = arith.constant 0 : i32
    return %arg0, %c0_i32, %c0_i32_0 : i32, i32, i32
  }
}

</mosaic_0001>

<bundles_post_ra>
// kernel: tpu_custom_call.1
= control target key start
LH: loop header
LB: loop body
LE: loop exit
PB: predicated region body
PF: predicated region fallthrough
CT: control target
= control target key end

     0   :  { %13 = vsyncpa [#allocation3], 0  ;;  %s1476_s0 = inlined_call_operand.vmem [shape: f32[2,32,256], index: 0, kind: input, shape index: {}]   ;;  %s1477_s1 = inlined_call_operand.vmem [shape: f32[8,32], index: 1, kind: input, shape index: {}]   ;;  %s1478_s2 = inlined_call_operand.vmem [shape: f32[8,1], index: 2, kind: input, shape index: {}]   ;;  %s1479_s3 = inlined_call_operand.vmem [shape: f32[9,8,1], index: 3, kind: input, shape index: {}]   ;;  %s1480_s4 = inlined_call_operand.vmem [shape: f32[8,1], index: 4, kind: input, shape index: {}]   ;;  %s1481_s5 = inlined_call_operand.vmem [shape: f32[32,8], index: 5, kind: input, shape index: {}]   ;;  %s1482_s6 = inlined_call_operand.vmem [shape: f32[32,1], index: 6, kind: input, shape index: {}]   ;;  %s1483_s7 = inlined_call_operand.vmem [shape: f32[9,1,256], index: 7, kind: input, shape index: {}]   ;;  %s1484_s8 = inlined_call_operand.hbm [shape: f32[2,32,256], index: 8, kind: output, shape index: {}]  }
   0x1   :  { %15 = vsyncpa [#allocation3 + $0x1], 0  ;;  %s1130_s27 = smov 0   ;;  %s1132_s28 = smov 0  }
   0x2   :  { %s1134_s29 = smov 0   ;;  %s1136_s30 = smov 0  }
   0x3 LB: > { %s1151_s9 = sadd.s32 4294967295, %s1071_s30   ;;  %s924_s10 = sadd.s32 4294967294, %s1071_s30   ;;  %s1071_s30 = sphi %s1136_s30, %s1490_s30   ;;  %s1067_s29 = sphi %s1134_s29, %s1489_s29   ;;  %s1063_s28 = sphi %s1132_s28, %s1488_s28   ;;  %s1059_s27 = sphi %s1130_s27, %s1487_s27  }
   0x4   : > { %s1155_s11 = sadd.s32 1, %s1071_s30   ;;  %s201_s12 = sadd.s32 1, %s1067_s29 }
   0x5   : > { %s198_s13 = ssub.s32 %s1071_s30, %s1155_s11  ;;  %p211_p0 = scmp.ne.s32.totalorder %s1067_s29, %s1063_s28 }
   0x6   : > { %p199_p1 = scmp.eq.s32.totalorder %s198_s13, 0  ;;  %p212_p2 = scmp.eq.s32.totalorder %s1151_s9, 1 }
   0x7   : > { %p217_p3 = scmp.ne.s32.totalorder %s1063_s28, %s1059_s27  ;;  %p218_p4 = scmp.eq.s32.totalorder %s924_s10, 1 }
   0x8   : > { %s1166_s14 = scalar_select %p199_p1, %s1067_s29, %s201_s12  }
   0x9   : > { %p1168_p5 = por %p212_p2, %p211_p0  ;;  %p1172_p6 = por %p218_p4, %p217_p3 }
   0xa   : > { %p927_p7 = scmp.ge.s32.totalorder %s1071_s30, 1  ;;  %p265_p8 = scmp.lt.s32.totalorder %s1071_s30, 3 }
   0xc   : > { %p266_p9 = pnand %p927_p7, %p265_p8 }
   0xd   : > { %p299_p10 = scmp.lt.s32.totalorder (!%p266_p9), %s1151_s9, 1  ;;  %s1076_s17 = smov (!%p266_p9), 17  }
   0xe   : > { %269 = sbr.rel (%p266_p9) target bundleno = 625 (0x271), region = 52  ;;  %s1077_s18 = smov (!%p266_p9), 113  }
   0xf   : > { %s1079_s20 = smov (!%p266_p9), 1   ;;  %s1080_s21 = smov (!%p266_p9), 127  }
  0x10   : > { %s1081_s22 = smov (!%p266_p9), 111   ;;  %s1082_s23 = smov (!%p266_p9), 112  }
  0x11   : > { %s296_s26 = sand.u32 (!%p266_p9), 1, %s1063_s28  }
  0x12   : > { %s928_s10 = sshll.u32 (!%p266_p9), %s296_s26, 6 }
  0x13   : > { %v305_v0 = vld [vmem:[%s1478_s2] sm:$0xff]  ;;  %v1073_v1 = vmov 0.0   ;;  %v1074_v2 = vmov 0   ;;  %s300_s19 = scalar_select %p299_p10, %s1151_s9, 1  ;;  %v933_v3 = vld [vmem:[%s1479_s3 + $0x8] sm:$0xff]  ;;  %v935_v5 = vld [vmem:[%s1479_s3 + $0x10] sm:$0xff]  ;;  %v409_v45 = vlaneseq }
  0x14   : > { %396 = vmatprep.mubr.f32.mxu0 %v1073_v1  ;;  %1009 = vset.pattern.permute.xlu0 %v1074_v2  ;;  %v428_v4 = vld [vmem:[%s1479_s3] sm:$0xff]  ;;  %v937_v10 = vld [vmem:[%s1479_s3 + $0x18] sm:$0xff]  ;;  %v941_v16 = vld [vmem:[%s1479_s3 + $0x28] sm:$0xff]  ;;  %vm328_vm0 = vcmask 261120   ;;  %vm722_vm9 = vcmask 64512   ;;  %s1408_s12 = scalar_lea.vmem [#allocation2], %s928_s10 }
  0x15   : > { %325 = vperm.xlu0 %1009, %v305_v0   ;;  %1010 = vset.pattern.permute.xlu1 %v1074_v2  ;;  %s957_s24 = sshll.u32 %s300_s19, 6  ;;  %v939_v12 = vld [vmem:[%s1479_s3 + $0x20] sm:$0xff]  ;;  %v943_v18 = vld [vmem:[%s1479_s3 + $0x30] sm:$0xff]  ;;  %v945_v19 = vld [vmem:[%s1479_s3 + $0x38] sm:$0xff]  ;;  %s1078_s19 = smov 16   ;;  %v417_v48 = vshrl.u32 %v409_v45, 7 }
  0x16   : > { %462 = vperm.xlu1 %1010, %v933_v3   ;;  %799 = vmatprep.mubr.f32.mxu1 %v1073_v1  ;;  %s303_s13 = scalar_lea.vmem %s1476_s0, %s957_s24  ;;  %v304_v17 = vld [vmem:[%s1477_s1] sm:$0xff]  ;;  %v312_v29 = vld [vmem:[%s1482_s6 + $0x8] sm:$0xff]  ;;  %v314_v31 = vld [vmem:[%s1482_s6 + $0x18] sm:$0xff]  ;;  %v1291_v49 = vand.u32 127, %v409_v45  ;;  %s1083_s24 = smov [#allocation2]  }
  0x17   : > { %v1197_v6 = vld [vmem:[%s303_s13 + $0x38] sm:$0xff]  ;;  %v1199_v7 = vld [vmem:[%s303_s13 + $0x30] sm:$0xff]  ;;  %v1201_v8 = vld [vmem:[%s303_s13 + $0x28] sm:$0xff]  ;;  %v1298_v53 = vsub.s32 0, %v417_v48  ;;  %v1300_v54 = vsub.s32 1, %v417_v48 }
  0x18   : > { %356 = vmatprep.subr.mxu0 %v1197_v6  ;;  %v1204_v9 = vld [vmem:[%s303_s13 + $0x20] sm:$0xff]  ;;  %v1210_v11 = vld [vmem:[%s303_s13 + $0x18] sm:$0xff]  ;;  %v1216_v13 = vld [vmem:[%s303_s13 + $0x10] sm:$0xff]  ;;  %vm440_vm1 = vcmp.lt.s32.totalorder %v1291_v49, 16  ;;  %vm411_vm2 = vcmp.lt.s32.totalorder %v1291_v49, 17  ;;  %vm473_vm3 = vcmp.lt.s32.totalorder %v1291_v49, 15 }
  0x19   : > { %431 = vperm.xlu0 %1009, %v428_v4   ;;  %357 = vmatpush1.msra.mxu0 %v1199_v7  ;;  %v1219_v14 = vld [vmem:[%s303_s13 + $0x8] sm:$0xff]  ;;  %v1222_v15 = vld [vmem:[%s303_s13] sm:$0xff]  ;;  %s1075_s13 = smov 15   ;;  %v313_v32 = vld [vmem:[%s1482_s6 + $0x10] sm:$0xff]  ;;  %vm506_vm4 = vcmp.lt.s32.totalorder %v1291_v49, 1  ;;  %vm565_vm5 = vcmp.lt.s32.totalorder %v1291_v49, 127 }
  0x1a   : > { %495 = vperm.xlu1 %1010, %v935_v5   ;;  %358 = vmatprep.subr.mxu0 %v1201_v8  ;;  %v947_v27 = vld [vmem:[%s1479_s3 + $0x40] sm:$0xff]  ;;  %vm631_vm6 = vcmp.lt.s32.totalorder %v1291_v49, 112  ;;  %vm598_vm7 = vcmp.lt.s32.totalorder %v1291_v49, 113  ;;  %vm664_vm8 = vcmp.lt.s32.totalorder %v1291_v49, 111 }
  0x1b   : > { %359 = vmatpush1.msra.mxu0 %v1204_v9  ;;  %v306_v28 = vld [vmem:[%s1480_s4] sm:$0xff] }
  0x1c   : > { %360 = vmatprep.subr.mxu0 %v1210_v11  ;;  %v311_v30 = vld [vmem:[%s1482_s6] sm:$0xff] }
  0x1d   : > { %528 = vperm.xlu0 %1009, %v937_v10   ;;  %361 = vmatpush1.msra.mxu0 %v1216_v13  ;;  %v932_v50 = vld [vmem:[%s1483_s7 + $0x2] sm:$0x3]  ;;  %v414_v55 = vld [vmem:[%s1483_s7] sm:$0x3]  ;;  %v934_v58 = vld [vmem:[%s1483_s7 + $0x4] sm:$0x3] }
  0x1e   : > { %554 = vperm.xlu1 %1010, %v939_v12   ;;  %362 = vmatprep.subr.mxu0 %v1219_v14  ;;  %v449_v56 = vrot.slane %v932_v50, %v1298_v53  ;;  %v453_v57 = vrot.slane %v932_v50, %v1300_v54  ;;  %v419_v63 = vrot.slane %v414_v55, %v1298_v53  ;;  %v307_v49 = vld [vmem:[%s1481_s5] sm:$0xff] }
  0x1f   : > { %363 = vmatpush1.msra.mxu0 %v1222_v15  ;;  %v423_v0 = vrot.slane %v414_v55, %v1300_v54  ;;  %v482_v4 = vrot.slane %v934_v58, %v1298_v53  ;;  %v486_v5 = vrot.slane %v934_v58, %v1300_v54 }
  0x20   : > { %931 = vmatmul.mubr.msk.f32.vlgmr.msra.gmra.mxu0 %vm328_vm0, %v304_v17 }
  0x21   : > { %587 = vperm.xlu0 %1009, %v941_v16   ;;  %v936_v16 = vld [vmem:[%s1483_s7 + $0x6] sm:$0x3] }
  0x22   : > { %620 = vperm.xlu1 %1010, %v943_v18  }
  0x25   : > { %653 = vperm.xlu0 %1009, %v945_v19   ;;  %v938_v19 = vld [vmem:[%s1483_s7 + $0x8] sm:$0x3] }
  0x90   : > { %v326_v20 = vpop.permute.xlu0 %325 }
  0x91   : > { %v463_v34 = vpop.permute.xlu1 %462 }
  0x94   : > { %v432_v33 = vpop.permute.xlu0 %431 }
  0x95   : > { %v496_v36 = vpop.permute.xlu1 %495 }
  0x98   : > { %v1279_v35 = vpop.permute.xlu0 %528 }
  0x99   : > { %v1283_v38 = vpop.permute.xlu1 %554 }
  0x9c   : > { %v1281_v37 = vpop.permute.xlu0 %587 }
  0x9d   : > { %v1287_v40 = vpop.permute.xlu1 %620 }
  0xa0   : > { %v1285_v39 = vpop.permute.xlu0 %653 }
  0xe0   : > { %v398_v21 = vpop.f32.mrf.mxu0 }
  0xe1   : > { %v399_v22 = vadd.f32 %v398_v21, %v326_v20 }
  0xe2   : > { %v400_v24 = vpop.f32.mrf.mxu0 }
  0xe3   : > { %v1239_v23 = vmax.f32 %v399_v22, 0.0  ;;  %v401_v25 = vadd.f32 %v400_v24, %v326_v20 }
  0xe5   : > { %469 = vrot.lane.b32.xlu0 %v1239_v23, %s1075_s13  ;;  %405 = vrot.lane.b32.xlu1 %v1239_v23, %s1076_s17  ;;  %v1246_v26 = vmax.f32 %v401_v25, 0.0 }
  0xe9   : > { %594 = vrot.lane.b32.xlu0 %v1239_v23, %s1077_s18  ;;  %436 = vrot.lane.b32.xlu1 %v1239_v23, %s1078_s19 }
  0xed   : > { %407 = vrot.lane.b32.xlu0 %v1246_v26, %s1076_s17  ;;  %502 = vrot.lane.b32.xlu1 %v1239_v23, %s1079_s20  ;;  %s862_s17 = sshll.u32 %s1408_s12, 4  ;;  %s1430_s17 = int_to_ptr.vmem [resolvable:$true] %s862_s17 }
  0xf1   : > { %438 = vrot.lane.b32.xlu0 %v1246_v26, %s1078_s19  ;;  %561 = vrot.lane.b32.xlu1 %v1239_v23, %s1080_s21 }
  0xf5   : > { %660 = vrot.lane.b32.xlu0 %v1239_v23, %s1081_s22  ;;  %627 = vrot.lane.b32.xlu1 %v1239_v23, %s1082_s23 }
  0xf9   : > { %504 = vrot.lane.b32.xlu0 %v1246_v26, %s1079_s20  ;;  %471 = vrot.lane.b32.xlu1 %v1246_v26, %s1075_s13  ;;  %s958_s13 = sshll.u32 %s1151_s9, 10  ;;  %s1435_s9 = scalar_lea.sflag [#allocation3], %s296_s26 }
  0xfd   : > { %563 = vrot.lane.b32.xlu0 %v1246_v26, %s1080_s21  ;;  %686 = vperm.xlu1 %1010, %v947_v27  }
 0x101   : > { %629 = vrot.lane.b32.xlu0 %v1246_v26, %s1082_s23  ;;  %596 = vrot.lane.b32.xlu1 %v1246_v26, %s1077_s18  ;;  %s1427_s23 = scalar_lea.hbm %s1484_s8, %s958_s13  ;;  %s1011_s18 = scalar_lea.vmem %s1430_s17, 1024 }
 0x102   : > { %p1012_p11 = scmp.ne.s32.totalorder %s1430_s17, %s1011_s18 }
 0x104   : > { %p1013_p12 = pnand %p1012_p11, %p1168_p5 }
 0x105   : > { %695 = vperm.xlu0 %1009, %v306_v28   ;;  %662 = vrot.lane.b32.xlu1 %v1246_v26, %s1081_s22  ;;  %s1015_s22 = sshll.u32 %s1083_s24, 4  ;;  %s1016_s22 = int_to_ptr.vmem [resolvable:$false] %s1015_s22 }
 0x106   : > { %p1014_p13 = pneg %p1013_p12  ;;  %s1017_s25 = scalar_lea.vmem %s1016_s22, 2048 }
 0x107   : > { %p1018_p0 = scmp.lt.s32.totalorder %s1430_s17, %s1016_s22  ;;  %p1019_p1 = scmp.lt.s32.totalorder %s1017_s25, %s1011_s18 }
 0x109   : > { %709 = vperm.xlu0 %1009, %v312_v29   ;;  %704 = vperm.xlu1 %1010, %v311_v30   ;;  %v515_v30 = vrot.slane %v936_v16, %v1298_v53  ;;  %p1020_p2 = por %p1019_p1, %p1018_p0 }
 0x10b   : > { %p1021_p3 = pnand %p1020_p2, %p1014_p13 }
 0x10d   : > { %719 = vperm.xlu0 %1009, %v314_v31   ;;  %714 = vperm.xlu1 %1010, %v313_v32   ;;  %v519_v31 = vrot.slane %v936_v16, %v1300_v54  ;;  %v541_v32 = vrot.slane %v938_v19, %v1298_v53 }
 0x10f   : > { %v548_v58 = vmul.f32 %v541_v32, %v1239_v23 }
 0x157   : > { %v470_v41 = vpop.permute.xlu0 %469  ;;  %v406_v42 = vpop.permute.xlu1 %405 }
 0x15b   : > { %v1289_v43 = vpop.permute.xlu0 %594  ;;  %v437_v44 = vpop.permute.xlu1 %436 }
 0x15f   : > { %v408_v46 = vpop.permute.xlu0 %407  ;;  %v503_v47 = vpop.permute.xlu1 %502 }
 0x160   : > { %v412_v2 = vsel %vm411_vm2, %v406_v42, %v408_v46  ;;  %v413_v3 = vsel %vm411_vm2, %v408_v46, %v406_v42  ;;  %v545_v42 = vrot.slane %v938_v19, %v1300_v54 }
 0x161   : > { %v426_v20 = vmul.f32 %v419_v63, %v413_v3  ;;  %v427_v21 = vmul.f32 %v423_v0, %v412_v2  ;;  %v557_v3 = vmul.f32 %v1283_v38, %v548_v58 }
 0x163   : > { %v439_v51 = vpop.permute.xlu0 %438  ;;  %v1296_v52 = vpop.permute.xlu1 %561  ;;  %v434_v46 = vmul.f32 %v432_v33, %v426_v20 }
 0x164   : > { %v441_v59 = vsel %vm440_vm1, %v437_v44, %v439_v51  ;;  %v442_v60 = vsel %vm440_vm1, %v439_v51, %v437_v44 }
 0x165   : > { %v456_v10 = vmul.f32 %v449_v56, %v442_v60  ;;  %v457_v12 = vmul.f32 %v453_v57, %v441_v59  ;;  %v940_v59 = vld [vmem:[%s1483_s7 + $0xa] sm:$0x3]  ;;  %v549_v60 = vmul.f32 %v545_v42, %v1246_v26  ;;  %v942_v26 = vld [vmem:[%s1483_s7 + $0xc] sm:$0x3] }
 0x166   : > { %v574_v23 = vrot.slane %v940_v59, %v1298_v53  ;;  %v578_v2 = vrot.slane %v940_v59, %v1300_v54  ;;  %v607_v20 = vrot.slane %v942_v26, %v1298_v53 }
 0x167   : > { %v1312_v61 = vpop.permute.xlu0 %660  ;;  %v1314_v62 = vpop.permute.xlu1 %627  ;;  %v465_v28 = vmul.f32 %v463_v34, %v456_v10  ;;  %v466_v29 = vmul.f32 %v463_v34, %v457_v12  ;;  %v558_v12 = vmul.f32 %v1283_v38, %v549_v60 }
 0x169   : > { %v467_v34 = vadd.f32 %v465_v28, %v434_v46 }
 0x16b   : > { %v505_v17 = vpop.permute.xlu0 %504  ;;  %v472_v18 = vpop.permute.xlu1 %471 }
 0x16c   : > { %v474_v22 = vsel %vm473_vm3, %v470_v41, %v472_v18  ;;  %v475_v24 = vsel %vm473_vm3, %v472_v18, %v470_v41  ;;  %v507_v44 = vsel %vm506_vm4, %v503_v47, %v505_v17  ;;  %v508_v45 = vsel %vm506_vm4, %v505_v17, %v503_v47 }
 0x16d   : > { %v489_v25 = vmul.f32 %v482_v4, %v475_v24  ;;  %v490_v27 = vmul.f32 %v486_v5, %v474_v22  ;;  %v435_v41 = vmul.f32 %v432_v33, %v427_v21  ;;  %v522_v56 = vmul.f32 %v515_v30, %v508_v45  ;;  %v944_v33 = vld [vmem:[%s1483_s7 + $0xe] sm:$0x3] }
 0x16e   : > { %v523_v57 = vmul.f32 %v519_v31, %v507_v44  ;;  %v640_v17 = vrot.slane %v944_v33, %v1298_v53  ;;  %v644_v19 = vrot.slane %v944_v33, %v1300_v54  ;;  %v611_v21 = vrot.slane %v942_v26, %v1300_v54 }
 0x16f   : > { %v498_v48 = vmul.f32 %v496_v36, %v489_v25  ;;  %v499_v50 = vmul.f32 %v496_v36, %v490_v27  ;;  %v564_v51 = vpop.permute.xlu0 %563  ;;  %v468_v55 = vadd.f32 %v466_v29, %v435_v41  ;;  %v531_v36 = vmul.f32 %v1279_v35, %v522_v56 }
 0x170   : > { %v532_v47 = vmul.f32 %v1279_v35, %v523_v57  ;;  %v566_v4 = vsel %vm565_vm5, %v1296_v52, %v564_v51  ;;  %v567_v5 = vsel %vm565_vm5, %v564_v51, %v1296_v52  ;;  %v946_v52 = vld [vmem:[%s1483_s7 + $0x10] sm:$0x3] }
 0x171   : > { %v500_v63 = vadd.f32 %v498_v48, %v467_v34  ;;  %v501_v0 = vadd.f32 %v499_v50, %v468_v55  ;;  %v581_v22 = vmul.f32 %v574_v23, %v566_v4  ;;  %v582_v24 = vmul.f32 %v578_v2, %v567_v5  ;;  %v309_v4 = vld [vmem:[%s1481_s5 + $0x10] sm:$0xff]  ;;  %v310_v5 = vld [vmem:[%s1481_s5 + $0x18] sm:$0xff] }
 0x172   : > { %v673_v30 = vrot.slane %v946_v52, %v1298_v53  ;;  %v677_v31 = vrot.slane %v946_v52, %v1300_v54 }
 0x173   : > { %v630_v10 = vpop.permute.xlu0 %629  ;;  %v533_v35 = vadd.f32 %v531_v36, %v500_v63  ;;  %v534_v16 = vadd.f32 %v532_v47, %v501_v0  ;;  %v591_v46 = vmul.f32 %v1281_v37, %v582_v24 }
 0x174   : > { %v632_v38 = vsel %vm631_vm6, %v1314_v62, %v630_v10  ;;  %v633_v25 = vsel %vm631_vm6, %v630_v10, %v1314_v62  ;;  %v590_v62 = vmul.f32 %v1281_v37, %v581_v22 }
 0x175   : > { %v559_v27 = vadd.f32 %v557_v3, %v533_v35  ;;  %v560_v28 = vadd.f32 %v558_v12, %v534_v16  ;;  %v647_v32 = vmul.f32 %v640_v17, %v632_v38  ;;  %v648_v42 = vmul.f32 %v644_v19, %v633_v25 }
 0x177   : > { %v592_v50 = vadd.f32 %v590_v62, %v559_v27  ;;  %v593_v53 = vadd.f32 %v591_v46, %v560_v28  ;;  %v656_v55 = vmul.f32 %v1285_v39, %v647_v32  ;;  %v657_v56 = vmul.f32 %v1285_v39, %v648_v42 }
 0x178   : > { %v687_v18 = vpop.permute.xlu1 %686 }
 0x17c   : > { %v597_v29 = vpop.permute.xlu1 %596 }
 0x17d   : > { %v599_v44 = vsel %vm598_vm7, %v1289_v43, %v597_v29  ;;  %v600_v45 = vsel %vm598_vm7, %v597_v29, %v1289_v43 }
 0x17e   : > { %v614_v41 = vmul.f32 %v607_v20, %v599_v44  ;;  %v615_v48 = vmul.f32 %v611_v21, %v600_v45 }
 0x180   : > { %v623_v54 = vmul.f32 %v1287_v40, %v614_v41  ;;  %v624_v51 = vmul.f32 %v1287_v40, %v615_v48  ;;  %v663_v34 = vpop.permute.xlu1 %662  ;;  %v696_v23 = vpop.permute.xlu0 %695 }
 0x181   : > { %v665_v43 = vsel %vm664_vm8, %v1312_v61, %v663_v34  ;;  %v666_v37 = vsel %vm664_vm8, %v663_v34, %v1312_v61  ;;  %v308_v61 = vld [vmem:[%s1481_s5 + $0x8] sm:$0xff] }
 0x182   : > { %v625_v57 = vadd.f32 %v623_v54, %v592_v50  ;;  %v680_v58 = vmul.f32 %v673_v30, %v665_v43  ;;  %v681_v59 = vmul.f32 %v677_v31, %v666_v37  ;;  %v626_v60 = vadd.f32 %v624_v51, %v593_v53 }
 0x184   : > { %v689_v63 = vmul.f32 %v687_v18, %v680_v58  ;;  %v659_v0 = vadd.f32 %v657_v56, %v626_v60  ;;  %v690_v40 = vmul.f32 %v687_v18, %v681_v59  ;;  %v658_v33 = vadd.f32 %v656_v55, %v625_v57  ;;  %v705_v10 = vpop.permute.xlu1 %704  ;;  %v710_v19 = vpop.permute.xlu0 %709 }
 0x186   : > { %v692_v36 = vadd.f32 %v690_v40, %v659_v0  ;;  %v691_v47 = vadd.f32 %v689_v63, %v658_v33 }
 0x188   : > { %v699_v39 = vadd.f32 %v696_v23, %v692_v36  ;;  %v698_v2 = vadd.f32 %v696_v23, %v691_v47  ;;  %v720_v44 = vpop.permute.xlu0 %719 }
 0x18a   : > { %v701_v26 = vmax.f32 %v699_v39, 0.0  ;;  %v700_v3 = vmax.f32 %v698_v2, 0.0 }
 0x18c   : > { %765 = vmatprep.subr.mxu1 %v701_v26 }
 0x18d   : > { %766 = vmatpush1.msra.mxu1 %v700_v3 }
 0x18e   : > { %948 = vmatmul.mubr.msk.f32.vlgmr.msra.gmra.mxu1 %vm722_vm9, %v307_v49 }
 0x18f   : > { %805 = vmatprep.mubr.f32.mxu1 %v1073_v1 }
 0x192   : > { %949 = vmatmul.mubr.msk.f32.gmra.mxu1 %vm722_vm9, %v308_v61 }
 0x193   : > { %811 = vmatprep.mubr.f32.mxu1 %v1073_v1 }
 0x196   : > { %950 = vmatmul.mubr.msk.f32.gmra.mxu1 %vm722_vm9, %v309_v4 }
 0x197   : > { %817 = vmatprep.mubr.f32.mxu1 %v1073_v1 }
 0x19a   : > { %951 = vmatmul.mubr.msk.f32.gmra.mxu1 %vm722_vm9, %v310_v5 }
 0x24e   : > { %v801_v12 = vpop.f32.mrf.mxu1 }
 0x24f   : > { %v802_v35 = vadd.f32 %v801_v12, %v705_v10 }
 0x250   : > { %v803_v16 = vpop.f32.mrf.mxu1 }
 0x251   : > { %v824_v17 = vadd.f32 %v802_v35, %v1222_v15  ;;  %v804_v18 = vadd.f32 %v803_v16, %v705_v10  ;;  %v715_v15 = vpop.permute.xlu1 %714 }
 0x252   : > { %v807_v20 = vpop.f32.mrf.mxu1 }
 0x253   : > { %v832_v21 = vmax.f32 %v824_v17, 0.0  ;;  %v825_v1 = vadd.f32 %v804_v18, %v1219_v14  ;;  %v808_v52 = vadd.f32 %v807_v20, %v710_v19 }
 0x254   : > { %v809_v22 = vpop.f32.mrf.mxu1 }
 0x255   : > { %840 = vst [vmem:[%s1408_s12] sm:$0xff] %v832_v21  ;;  %v833_v24 = vmax.f32 %v825_v1, 0.0  ;;  %v826_v38 = vadd.f32 %v808_v52, %v1216_v13  ;;  %v810_v25 = vadd.f32 %v809_v22, %v710_v19 }
 0x256   : > { %v813_v27 = vpop.f32.mrf.mxu1 }
 0x257   : > { %841 = vst [vmem:[%s1408_s12 + $0x8] sm:$0xff] %v833_v24  ;;  %v834_v28 = vmax.f32 %v826_v38, 0.0  ;;  %v827_v14 = vadd.f32 %v810_v25, %v1210_v11  ;;  %v814_v29 = vadd.f32 %v813_v27, %v715_v15 }
 0x258   : > { %v815_v30 = vpop.f32.mrf.mxu1 }
 0x259   : > { %842 = vst [vmem:[%s1408_s12 + $0x10] sm:$0xff] %v834_v28  ;;  %v835_v31 = vmax.f32 %v827_v14, 0.0  ;;  %v828_v32 = vadd.f32 %v814_v29, %v1204_v9  ;;  %v816_v42 = vadd.f32 %v815_v30, %v715_v15 }
 0x25a   : > { %v819_v13 = vpop.f32.mrf.mxu1 }
 0x25b   : > { %843 = vst [vmem:[%s1408_s12 + $0x18] sm:$0xff] %v835_v31  ;;  %v836_v45 = vmax.f32 %v828_v32, 0.0  ;;  %v829_v62 = vadd.f32 %v816_v42, %v1201_v8  ;;  %v820_v46 = vadd.f32 %v819_v13, %v720_v44 }
 0x25c   : > { %v821_v11 = vpop.f32.mrf.mxu1 }
 0x25d   : > { %844 = vst [vmem:[%s1408_s12 + $0x20] sm:$0xff] %v836_v45  ;;  %v837_v41 = vmax.f32 %v829_v62, 0.0  ;;  %v830_v48 = vadd.f32 %v820_v46, %v1199_v7  ;;  %v822_v50 = vadd.f32 %v821_v11, %v720_v44 }
 0x25f   : > { %845 = vst [vmem:[%s1408_s12 + $0x28] sm:$0xff] %v837_v41  ;;  %v838_v9 = vmax.f32 %v830_v48, 0.0  ;;  %v831_v53 = vadd.f32 %v822_v50, %v1197_v6 }
 0x261   : > { %846 = vst [vmem:[%s1408_s12 + $0x30] sm:$0xff] %v838_v9  ;;  %v839_v8 = vmax.f32 %v831_v53, 0.0 }
 0x263   : > { %847 = vst [vmem:[%s1408_s12 + $0x38] sm:$0xff] %v839_v8 }
 0x264   : > { %1024 = shalt.err (!%p1021_p3)
}
 0x265   : > { %s1025_s26 = scalar_lea.hbm %s1427_s23, 1024  ;;  %s1029_s13 = scalar_lea.hbm %s1484_s8, 2048 }
 0x266   : > { %p1026_p4 = scmp.ne.s32.totalorder %s1427_s23, %s1025_s26  ;;  %p1030_p9 = scmp.lt.s32.totalorder %s1427_s23, %s1484_s8 }
 0x267   : > { %p1031_p10 = scmp.lt.s32.totalorder %s1029_s13, %s1025_s26 }
 0x268   : > { %p1027_p7 = pnand %p1026_p4, %p1168_p5 }
 0x269   : > { %p1032_p11 = por %p1031_p10, %p1030_p9 }
 0x26a   : > { %p1028_p8 = pneg %p1027_p7 }
 0x26c   : > { %p1033_p12 = pnand %p1032_p11, %p1028_p8 }
 0x26e   : > { %1036 = shalt.err (!%p1033_p12)
}
 0x26f   : > { %s1084_s18 = smov 256  }
 0x270   : > { %959 = dma.vmem_to_hbm [thread:$0]  (%p1168_p5), %s1430_s17, 1024, %s1427_s23, %s1435_s9, %s1084_s18, %s1084_s18, %s1078_s19  }
 0x271 PF: > { %p965_p13 = scmp.ge.s32.totalorder %s1071_s30, 2  ;;  %s877_s24 = sand.u32 1, %s1059_s27  }
 0x272   : > { %s878_s22 = scalar_lea.sflag [#allocation3], %s877_s24 }
 0x273   : > { %p962_p0 = pnand %p965_p13, %p1172_p6 }
 0x275   : > { %p963_p1 = pneg %p962_p0 }
 0x277   : > { %1054 = dma.done.wait (%p963_p1), %s878_s22, 1024  }
 0x278   : > { %1056 = vsyncadd (%p963_p1), %s878_s22, 4294966272  ;;  %p18_p2 = scmp.ge.s32.totalorder %s1155_s11, 4   ;;  %s1487_s27 = smov %s1063_s28 }
 0x279   : > { %s1488_s28 = smov %s1067_s29  ;;  %s1489_s29 = smov %s1166_s14 }
 0x27a   : > { %s1490_s30 = smov %s1155_s11  ;;  %20 = sbr.rel (!%p18_p2) target bundleno = 3 (0x3), region = 103 }
 0x27f   :  { %883 = vsyncpa [#allocation3], 1 }
 0x280   :  { %885 = vsyncpa [#allocation3 + $0x1], 1 }

</bundles_post_ra>
